<compile_context>
chip_gen: v7x
topology: tpu7x:2x2x1
jax: 0.10.0
libtpu: 0.0.40
codegen_flags: <defaults>
</compile_context>

<pallas_src>
import functools

import jax
import jax.numpy as jnp
from jax.experimental import pallas as pl
from jax.experimental.pallas import tpu as pltpu

RRELU_SLOPE = (0.1 + 0.7) / 2.0  # eval-mode RReLU negative slope
LANE = 128                       # TPU lane width (last-dim alignment)
_MIN_TH = 512                    # smallest H slice when H-tiling kicks in
_MIB = 1024 * 1024


def _round_up(n, m):
    return ((n + m - 1) // m) * m


def _vmem_limit_bytes():
    """Per-chip scoped-VMEM limit (~80% of physical VMEM per TensorCore)."""
    try:
        cap = int(getattr(pltpu.get_tpu_info(), "vmem_capacity_bytes", 0))
    except Exception:
        cap = 0
    if cap <= 0:
        cap = 64 * _MIB  # v7x per-core VMEM: safe lower bound everywhere
    return max(32 * _MIB, int(cap * 0.8))


def _choose_tiles(rows, Din_p, H_p, Dout_p, tm_req, out_itemsize, budget):
    """Pick (row tile, H tile, weight buffer count) fitting the VMEM budget."""
    tm = max(8, min(tm_req, _round_up(rows, 8)))
    # Prefer >= 2 row-grid steps so the "parallel" axis can shard across both
    # v7x TensorCores when the batch is big enough to matter.
    if tm > 128 and _round_up(rows, tm) // tm < 2:
        tm = _round_up(pl.cdiv(rows, 2), 8)

    def fits(tm, th, wbuf):
        vmem = (2 * tm * Din_p * 2                 # x tile (bf16, double-buf)
                + wbuf * Din_p * th * 2            # W1 slice(s), bf16
                + wbuf * th * Dout_p * 2           # W2 slice(s), bf16
                + wbuf * 8 * th * 4                # b1 slice(s), sublane-padded
                + 8 * Dout_p * 4                   # b2
                + 2 * tm * Dout_p * out_itemsize   # output tile (double-buf)
                + tm * Dout_p * 4                  # f32 accumulator scratch
                + tm * th * 4)                     # f32 h temporary
        return vmem <= budget

    th, wbuf = H_p, 1          # weights fully resident -> single-buffered
    while not fits(tm, th, wbuf) and th > _MIN_TH and th % 256 == 0:
        th //= 2
        wbuf = 2               # slices now stream along H -> double-buffer
    while not fits(tm, th, wbuf) and tm > 128:
        tm = _round_up(tm // 2, 8)
    return tm, th, wbuf


def _mlp_kernel(x_ref, w1_ref, b1_ref, w2_ref, b2_ref, o_ref, acc_ref):
    j = pl.program_id(1)

    @pl.when(j == 0)
    def _():
        acc_ref[...] = jnp.zeros_like(acc_ref)

    # fc1 slice: (tm, Din) @ (Din, th), bf16 inputs, f32 accumulation (MXU).
    h = jnp.dot(x_ref[...], w1_ref[...], preferred_element_type=jnp.float32)
    h = h + b1_ref[...]
    # RReLU (eval): leaky ReLU with negative slope 0.4 (VPU).
    h = jnp.where(h >= 0.0, h, RRELU_SLOPE * h)
    # dropout(p=0.0) == identity
    # fc2 partial sum over this H slice: (tm, th) @ (th, Dout) -> f32 acc.
    acc_ref[...] += jnp.dot(h.astype(w2_ref.dtype), w2_ref[...],
                            preferred_element_type=jnp.float32)

    @pl.when(j == pl.num_programs(1) - 1)
    def _():
        o_ref[...] = (acc_ref[...] + b2_ref[...]).astype(o_ref.dtype)


def prepare_mlp_params(w1, b1, w2, b2, compute_dtype=jnp.bfloat16):
    """Cast + 128-lane zero-pad the parameters ONCE at setup time.

    Zero padding is exact: padded weight rows/cols and bias entries are zero,
    and padded output columns are sliced off in the wrapper.
    """
    Din, H = w1.shape
    Dout = w2.shape[1]
    Din_p, H_p, Dout_p = (_round_up(d, LANE) for d in (Din, H, Dout))
    w1p = jnp.pad(w1.astype(compute_dtype), ((0, Din_p - Din), (0, H_p - H)))
    w2p = jnp.pad(w2.astype(compute_dtype), ((0, H_p - H), (0, Dout_p - Dout)))
    b1p = jnp.pad(b1.astype(jnp.float32), (0, H_p - H)).reshape(1, H_p)
    b2p = jnp.pad(b2.astype(jnp.float32), (0, Dout_p - Dout)).reshape(1, Dout_p)
    return w1p, b1p, w2p, b2p


@functools.partial(jax.jit, static_argnames=("out_features", "tm", "out_dtype"))
def mlp_forward(x, w1p, b1p, w2p, b2p, *, out_features, tm=512, out_dtype=None):
    """x: (B, S, Din); params from prepare_mlp_params. Returns (B, S, out_features)."""
    B, S, Din = x.shape
    Din_p, H_p = w1p.shape
    Dout_p = w2p.shape[1]
    rows = B * S
    compute_dtype = w1p.dtype
    out_dt = x.dtype if out_dtype is None else out_dtype
    out_itemsize = jnp.dtype(out_dt).itemsize

    vmem_limit = _vmem_limit_bytes()
    tm_eff, th, wbuf = _choose_tiles(
        rows, Din_p, H_p, Dout_p, tm, out_itemsize,
        budget=int(vmem_limit * 0.85))
    rows_p = _round_up(rows, tm_eff)

    x2 = x.reshape(rows, Din).astype(compute_dtype)
    pad_r, pad_d = rows_p - rows, Din_p - Din
    if pad_r or pad_d:  # skip the pad op entirely when already aligned
        x2 = jnp.pad(x2, ((0, pad_r), (0, pad_d)))

    w_itemsize = jnp.dtype(compute_dtype).itemsize
    n_weight_streams = 1 if th == H_p else rows_p // tm_eff
    cost = pl.CostEstimate(
        flops=2 * rows_p * (Din_p * H_p + H_p * Dout_p),
        transcendentals=0,
        bytes_accessed=(rows_p * Din_p * w_itemsize
                        + n_weight_streams * (Din_p * H_p + H_p * Dout_p) * w_itemsize
                        + (H_p + Dout_p) * 4
                        + rows_p * Dout_p * out_itemsize),
    )

    wmode = pl.Buffered(wbuf)
    out2 = pl.pallas_call(
        _mlp_kernel,
        out_shape=jax.ShapeDtypeStruct((rows_p, Dout_p), out_dt),
        grid_spec=pltpu.PrefetchScalarGridSpec(
            num_scalar_prefetch=0,
            grid=(rows_p // tm_eff, H_p // th),
            in_specs=[
                pl.BlockSpec((tm_eff, Din_p), lambda i, j: (i, 0)),     # x tile
                pl.BlockSpec((Din_p, th), lambda i, j: (0, j),
                             pipeline_mode=wmode),                      # W1 slice
                pl.BlockSpec((1, th), lambda i, j: (0, j),
                             pipeline_mode=wmode),                      # b1 slice
                pl.BlockSpec((th, Dout_p), lambda i, j: (j, 0),
                             pipeline_mode=wmode),                      # W2 slice
                pl.BlockSpec((1, Dout_p), lambda i, j: (0, 0),
                             pipeline_mode=pl.Buffered(1)),             # b2
            ],
            out_specs=pl.BlockSpec((tm_eff, Dout_p), lambda i, j: (i, 0)),
            scratch_shapes=[pltpu.VMEM((tm_eff, Dout_p), jnp.float32)],
        ),
        compiler_params=pltpu.CompilerParams(
            dimension_semantics=("parallel", "arbitrary"),
            vmem_limit_bytes=vmem_limit,
        ),
        cost_estimate=cost,
    )(x2, w1p, b1p, w2p, b2p)

    return out2[:rows, :out_features].reshape(B, S, out_features)


def init_mlp_params(key, in_feature, hidden_feature, out_feature,
                    dtype=jnp.float32):
    """Deterministic init mimicking nn.Linear (uniform +-1/sqrt(fan_in))."""
    k1, k2, k3, k4 = jax.random.split(key, 4)
    bound1 = 1.0 / (in_feature ** 0.5)
    bound2 = 1.0 / (hidden_feature ** 0.5)
    # stored as (in, out) so the kernel does x @ W
    w1 = jax.random.uniform(k1, (in_feature, hidden_feature), dtype,
                            minval=-bound1, maxval=bound1)
    b1 = jax.random.uniform(k2, (hidden_feature,), dtype,
                            minval=-bound1, maxval=bound1)
    w2 = jax.random.uniform(k3, (hidden_feature, out_feature), dtype,
                            minval=-bound2, maxval=bound2)
    b2 = jax.random.uniform(k4, (out_feature,), dtype,
                            minval=-bound2, maxval=bound2)
    return w1, b1, w2, b2


if __name__ == "__main__":
    # Small ViT-like shapes: batch=2, seq=8, in=32, hidden=64, out=32
    B, S, Din, H, Dout = 2, 8, 32, 64, 32

    key = jax.random.PRNGKey(0)
    kx, kp = jax.random.split(key)
    x = jax.random.normal(kx, (B, S, Din), dtype=jnp.float32)
    w1, b1, w2, b2 = init_mlp_params(kp, Din, H, Dout)

    # Cast/pad parameters once at setup (not per forward call).
    w1p, b1p, w2p, b2p = prepare_mlp_params(w1, b1, w2, b2)

    out = mlp_forward(x, w1p, b1p, w2p, b2p, out_features=Dout)
    out = jax.block_until_ready(out)
    assert out.shape == (B, S, Dout)

    # Pure-JAX reference mirroring the kernel's bf16-compute / f32-accumulate
    # math (eval-mode RReLU = leaky ReLU with slope 0.4, dropout p=0 = id).
    bf = jnp.bfloat16
    xr = x.reshape(-1, Din).astype(bf).astype(jnp.float32)
    w1r = w1.astype(bf).astype(jnp.float32)
    w2r = w2.astype(bf).astype(jnp.float32)
    h_ref = xr @ w1r + b1
    h_ref = jnp.where(h_ref >= 0, h_ref, RRELU_SLOPE * h_ref)
    h_ref = h_ref.astype(bf).astype(jnp.float32)
    ref = (h_ref @ w2r + b2).reshape(B, S, Dout)
    assert jnp.allclose(out, ref, atol=2e-2, rtol=2e-2), "mismatch vs reference"

    print("KERNEL_OK")
</pallas_src>

<mosaic_0001>
module attributes {stable_mosaic.version = 11 : i64} {
  func.func @_mlp_kernel(%arg0: i32, %arg1: i32, %arg2: memref<16x128xbf16, #tpu.memory_space<vmem>>, %arg3: memref<128x128xbf16, #tpu.memory_space<vmem>>, %arg4: memref<1x128xf32, #tpu.memory_space<vmem>>, %arg5: memref<128x128xbf16, #tpu.memory_space<vmem>>, %arg6: memref<1x128xf32, #tpu.memory_space<vmem>>, %arg7: memref<16x128xf32, #tpu.memory_space<vmem>>, %arg8: memref<16x128xf32, #tpu.memory_space<vmem>>) attributes {dimension_semantics = [#tpu.dimension_semantics<parallel>, #tpu.dimension_semantics<arbitrary>], iteration_bounds = array<i64: 1, 1>, scalar_prefetch = 0 : i64, scratch_operands = 1 : i64, tpu.core_type = #tpu.core_type<tc>, window_params = [{transform_indices = @transform_0, window_bounds = array<i64: 16, 128>}, {pipeline_mode = #tpu.pipeline_mode<synchronous>, transform_indices = @transform_1, window_bounds = array<i64: 128, 128>}, {pipeline_mode = #tpu.pipeline_mode<synchronous>, transform_indices = @transform_2, window_bounds = array<i64: 1, 128>}, {pipeline_mode = #tpu.pipeline_mode<synchronous>, transform_indices = @transform_3, window_bounds = array<i64: 128, 128>}, {pipeline_mode = #tpu.pipeline_mode<synchronous>, transform_indices = @transform_4, window_bounds = array<i64: 1, 128>}, {transform_indices = @transform_5, window_bounds = array<i64: 16, 128>}]} {
    %c0_i32 = arith.constant 0 : i32
    %0 = arith.cmpi eq, %arg1, %c0_i32 : i32
    %1 = arith.extui %0 : i1 to i32
    %c0_i32_0 = arith.constant 0 : i32
    %2 = arith.cmpi ne, %1, %c0_i32_0 : i32
    scf.if %2 {
      %cst_17 = arith.constant 0.000000e+00 : f32
      %23 = vector.broadcast %cst_17 : f32 to vector<16x128xf32>
      %c0_18 = arith.constant 0 : index
      %c0_19 = arith.constant 0 : index
      %24 = vector.load %arg8[%c0_18, %c0_19] : memref<16x128xf32, #tpu.memory_space<vmem>>, vector<16x128xf32>
      tpu.vector_store %arg8[%c0_18, %c0_19], %23 {strides = array<i32>} : memref<16x128xf32, #tpu.memory_space<vmem>>, vector<16x128xf32>,
    } else {
    }
    %c0 = arith.constant 0 : index
    %c0_1 = arith.constant 0 : index
    %3 = vector.load %arg2[%c0, %c0_1] : memref<16x128xbf16, #tpu.memory_space<vmem>>, vector<16x128xbf16>
    %c0_2 = arith.constant 0 : index
    %c0_3 = arith.constant 0 : index
    %4 = vector.load %arg3[%c0_2, %c0_3] : memref<128x128xbf16, #tpu.memory_space<vmem>>, vector<128x128xbf16>
    %cst = arith.constant dense<0.000000e+00> : vector<16x128xf32>
    %5 = tpu.matmul %3, %4, %cst {dimension_numbers = #tpu.dot_dimension_numbers<[1], [0], [0], [1], [0, 0, 1, 1], [], []>} : vector<16x128xbf16>, vector<128x128xbf16>, vector<16x128xf32> -> vector<16x128xf32>
    %c0_4 = arith.constant 0 : index
    %c0_5 = arith.constant 0 : index
    %6 = vector.load %arg4[%c0_4, %c0_5] : memref<1x128xf32, #tpu.memory_space<vmem>>, vector<1x128xf32>
    %7 = vector.broadcast %6 : vector<1x128xf32> to vector<16x128xf32>
    %8 = arith.addf %5, %7 : vector<16x128xf32>
    %cst_6 = arith.constant 0.000000e+00 : f32
    %9 = vector.broadcast %cst_6 : f32 to vector<16x128xf32>
    %10 = arith.cmpf oge, %8, %9 : vector<16x128xf32>
    %cst_7 = arith.constant 4.000000e-01 : f32
    %11 = vector.broadcast %cst_7 : f32 to vector<16x128xf32>
    %12 = arith.mulf %11, %8 : vector<16x128xf32>
    %13 = arith.select %10, %8, %12 : vector<16x128xi1>, vector<16x128xf32>
    %c0_8 = arith.constant 0 : index
    %c0_9 = arith.constant 0 : index
    %14 = vector.load %arg8[%c0_8, %c0_9] : memref<16x128xf32, #tpu.memory_space<vmem>>, vector<16x128xf32>
    %15 = arith.truncf %13 : vector<16x128xf32> to vector<16x128xbf16>
    %c0_10 = arith.constant 0 : index
    %c0_11 = arith.constant 0 : index
    %16 = vector.load %arg5[%c0_10, %c0_11] : memref<128x128xbf16, #tpu.memory_space<vmem>>, vector<128x128xbf16>
    %cst_12 = arith.constant dense<0.000000e+00> : vector<16x128xf32>
    %17 = tpu.matmul %15, %16, %cst_12 {dimension_numbers = #tpu.dot_dimension_numbers<[1], [0], [0], [1], [0, 0, 1, 1], [], []>} : vector<16x128xbf16>, vector<128x128xbf16>, vector<16x128xf32> -> vector<16x128xf32>
    %18 = arith.addf %14, %17 : vector<16x128xf32>
    %c0_13 = arith.constant 0 : index
    %c0_14 = arith.constant 0 : index
    %19 = vector.load %arg8[%c0_13, %c0_14] : memref<16x128xf32, #tpu.memory_space<vmem>>, vector<16x128xf32>
    tpu.vector_store %arg8[%c0_13, %c0_14], %18 {strides = array<i32>} : memref<16x128xf32, #tpu.memory_space<vmem>>, vector<16x128xf32>,
    %c0_i32_15 = arith.constant 0 : i32
    %20 = arith.cmpi eq, %arg1, %c0_i32_15 : i32
    %21 = arith.extui %20 : i1 to i32
    %c0_i32_16 = arith.constant 0 : i32
    %22 = arith.cmpi ne, %21, %c0_i32_16 : i32
    scf.if %22 {
      %c0_17 = arith.constant 0 : index
      %c0_18 = arith.constant 0 : index
      %23 = vector.load %arg8[%c0_17, %c0_18] : memref<16x128xf32, #tpu.memory_space<vmem>>, vector<16x128xf32>
      %c0_19 = arith.constant 0 : index
      %c0_20 = arith.constant 0 : index
      %24 = vector.load %arg6[%c0_19, %c0_20] : memref<1x128xf32, #tpu.memory_space<vmem>>, vector<1x128xf32>
      %25 = vector.broadcast %24 : vector<1x128xf32> to vector<16x128xf32>
      %26 = arith.addf %23, %25 : vector<16x128xf32>
      %c0_21 = arith.constant 0 : index
      %c0_22 = arith.constant 0 : index
      %27 = vector.load %arg7[%c0_21, %c0_22] : memref<16x128xf32, #tpu.memory_space<vmem>>, vector<16x128xf32>
      tpu.vector_store %arg7[%c0_21, %c0_22], %26 {strides = array<i32>} : memref<16x128xf32, #tpu.memory_space<vmem>>, vector<16x128xf32>,
    } else {
    }
    return
  }
  func.func @transform_0(%arg0: i32, %arg1: i32) -> (i32, i32) {
    %c0_i32 = arith.constant 0 : i32
    %c0_i32_0 = arith.constant 0 : i32
    return %arg0, %c0_i32 : i32, i32
  }
  func.func @transform_1(%arg0: i32, %arg1: i32) -> (i32, i32) {
    %c0_i32 = arith.constant 0 : i32
    %c0_i32_0 = arith.constant 0 : i32
    return %c0_i32, %arg1 : i32, i32
  }
  func.func @transform_2(%arg0: i32, %arg1: i32) -> (i32, i32) {
    %c0_i32 = arith.constant 0 : i32
    %c0_i32_0 = arith.constant 0 : i32
    return %c0_i32, %arg1 : i32, i32
  }
  func.func @transform_3(%arg0: i32, %arg1: i32) -> (i32, i32) {
    %c0_i32 = arith.constant 0 : i32
    %c0_i32_0 = arith.constant 0 : i32
    return %arg1, %c0_i32 : i32, i32
  }
  func.func @transform_4(%arg0: i32, %arg1: i32) -> (i32, i32) {
    %c0_i32 = arith.constant 0 : i32
    %c0_i32_0 = arith.constant 0 : i32
    %c0_i32_1 = arith.constant 0 : i32
    return %c0_i32, %c0_i32_0 : i32, i32
  }
  func.func @transform_5(%arg0: i32, %arg1: i32) -> (i32, i32) {
    %c0_i32 = arith.constant 0 : i32
    %c0_i32_0 = arith.constant 0 : i32
    return %arg0, %c0_i32 : i32, i32
  }
}

</mosaic_0001>

<bundles_post_ra>
// kernel: mlp_forward.1
= control target key start
LH: loop header
LB: loop body
LE: loop exit
PB: predicated region body
PF: predicated region fallthrough
CT: control target
= control target key end

     0   :  { %10 = vsyncpa [#allocation4], 0  ;;  %s538_s0 = inlined_call_operand.vmem [shape: bf16[16,128], index: 0, kind: input, shape index: {}]   ;;  %s539_s1 = inlined_call_operand.hbm [shape: bf16[128,128], index: 1, kind: input, shape index: {}]   ;;  %s540_s2 = inlined_call_operand.vmem [shape: f32[1,128], index: 2, kind: input, shape index: {}]   ;;  %s541_s3 = inlined_call_operand.hbm [shape: bf16[128,128], index: 3, kind: input, shape index: {}]   ;;  %s542_s4 = inlined_call_operand.vmem [shape: f32[1,128], index: 4, kind: input, shape index: {}]   ;;  %s543_s5 = inlined_call_operand.vmem [shape: f32[16,128], index: 5, kind: output, shape index: {}]  }
   0x1   :  { %11 = vsyncpa [#allocation6], 0  ;;  %s463_s18 = smov [#allocation3]   ;;  %s415_s22 = scalar_lea.hbm %s539_s1, 1024 }
   0x2   :  { %s19_s19 = sshll.u32 %s463_s18, 4  ;;  %p416_p0 = scmp.ne.s32.totalorder %s539_s1, %s415_s22  ;;  %s20_s19 = int_to_ptr.vmem [resolvable:$true] %s19_s19 }
   0x3   :  { %p419_p1 = scmp.lt.u32.totalorder %s415_s22, %s539_s1 }
   0x5   :  { %p421_p2 = pnand %p419_p1, %p416_p0 }
   0x7   :  { %424 = shalt.err (!%p421_p2)
}
   0x8   :  { %s425_s27 = scalar_lea.vmem %s20_s19, 1024  ;;  %p430_p4 = scmp.lt.s32.totalorder %s20_s19, %s20_s19 }
   0x9   :  { %p426_p3 = scmp.ne.s32.totalorder %s20_s19, %s425_s27  ;;  %p431_p5 = scmp.lt.s32.totalorder %s425_s27, %s425_s27 }
   0xb   :  { %p432_p6 = por %p431_p5, %p430_p4 }
   0xd   :  { %p433_p7 = pnand %p432_p6, %p426_p3 }
   0xf   :  { %436 = shalt.err (!%p433_p7)
}
  0x10   :  { %s464_s28 = smov 64   ;;  %s465_s29 = smov 4  }
  0x11   :  { %25 = dma.hbm_to_vmem [thread:$0]  %s539_s1, 1024, %s20_s19, [#allocation4], %s464_s28, %s464_s28, %s465_s29  }
  0x12   :  { %s466_s7 = smov [#allocation5]   ;;  %s437_s11 = scalar_lea.hbm %s541_s3, 1024 }
  0x13   :  { %s33_s8 = sshll.u32 %s466_s7, 4  ;;  %p438_p8 = scmp.ne.s32.totalorder %s541_s3, %s437_s11  ;;  %s34_s8 = int_to_ptr.vmem [resolvable:$true] %s33_s8 }
  0x14   :  { %p441_p9 = scmp.lt.u32.totalorder %s437_s11, %s541_s3 }
  0x16   :  { %p443_p10 = pnand %p441_p9, %p438_p8 }
  0x18   :  { %446 = shalt.err (!%p443_p10)
}
  0x19   :  { %s447_s16 = scalar_lea.vmem %s34_s8, 1024  ;;  %p452_p12 = scmp.lt.s32.totalorder %s34_s8, %s34_s8 }
  0x1a   :  { %p448_p11 = scmp.ne.s32.totalorder %s34_s8, %s447_s16  ;;  %p453_p13 = scmp.lt.s32.totalorder %s447_s16, %s447_s16 }
  0x1c   :  { %p454_p0 = por %p453_p13, %p452_p12 }
  0x1e   :  { %p455_p1 = pnand %p454_p0, %p448_p11 }
  0x20   :  { %458 = shalt.err (!%p455_p1)
}
  0x21   :  { %39 = dma.hbm_to_vmem [thread:$0]  %s541_s3, 1024, %s34_s8, [#allocation6], %s464_s28, %s464_s28, %s465_s29  }
  0x22   :  { %459 = dma.done.wait [#allocation4], 1024  }
  0x23   :  { %460 = vsyncadd [#allocation4], 4294966272 }
  0x24   :  { %461 = dma.done.wait [#allocation6], 1024  }
  0x25   :  { %462 = vsyncadd [#allocation6], 4294966272  ;;  %v467_v0 = vmov 0.0   ;;  %vm468_vm0 = vmmov 0   ;;  %v398_v1 = vld [vmem:[#allocation3] sm:$0xff]   ;;  %v399_v2 = vld [vmem:[#allocation3 + $0x8] sm:$0xff]  }
  0x26   :  { %352 = vmatprep.subr.bf16.mxu0 %v467_v0  ;;  %368 = vmatprep.mubr.msk.bf16.mxu0 %vm468_vm0, %v467_v0  ;;  %v400_v3 = vld [vmem:[#allocation3 + $0x10] sm:$0xff]   ;;  %v407_v4 = vld [vmem:[#allocation5] sm:$0xff]   ;;  %v401_v5 = vld [vmem:[#allocation3 + $0x18] sm:$0xff]  }
  0x27   :  { %372 = vmatprep.subr.bf16.mxu1 %v467_v0  ;;  %388 = vmatprep.mubr.msk.bf16.mxu1 %vm468_vm0, %v467_v0  ;;  %v408_v6 = vld [vmem:[#allocation5 + $0x8] sm:$0xff]   ;;  %v402_v7 = vld [vmem:[#allocation3 + $0x20] sm:$0xff]   ;;  %v409_v8 = vld [vmem:[#allocation5 + $0x10] sm:$0xff]  }
  0x28   :  { %353 = vmatpush3.bf16.msra.mxu0 %v398_v1  ;;  %373 = vmatpush3.bf16.msra.mxu1 %v407_v4  ;;  %v403_v9 = vld [vmem:[#allocation3 + $0x28] sm:$0xff]   ;;  %v410_v10 = vld [vmem:[#allocation5 + $0x18] sm:$0xff]   ;;  %v404_v11 = vld [vmem:[#allocation3 + $0x30] sm:$0xff]  }
  0x29   :  { %354 = vmatprep.subr.bf16.mxu0 %v467_v0  ;;  %374 = vmatprep.subr.bf16.mxu1 %v467_v0  ;;  %v411_v12 = vld [vmem:[#allocation5 + $0x20] sm:$0xff]   ;;  %v405_v13 = vld [vmem:[#allocation3 + $0x38] sm:$0xff]   ;;  %v412_v14 = vld [vmem:[#allocation5 + $0x28] sm:$0xff]  }
  0x2a   :  { %v406_v15 = vld [vmem:[%s538_s0] sm:$0xff]   ;;  %v413_v16 = vld [vmem:[#allocation5 + $0x30] sm:$0xff]   ;;  %v414_v17 = vld [vmem:[#allocation5 + $0x38] sm:$0xff]  }
  0x2b   :  { %v315_v18 = vld [vmem:[%s540_s2] ss:$0 sm:$0xff] }
  0x2c   :  { %355 = vmatpush3.bf16.msra.mxu0 %v399_v2  ;;  %375 = vmatpush3.bf16.msra.mxu1 %v408_v6  ;;  %v333_v30 = vld [vmem:[%s542_s4] ss:$0 sm:$0xff] }
  0x2d   :  { %356 = vmatprep.subr.bf16.mxu0 %v467_v0  ;;  %376 = vmatprep.subr.bf16.mxu1 %v467_v0 }
  0x30   :  { %357 = vmatpush3.bf16.msra.mxu0 %v400_v3  ;;  %377 = vmatpush3.bf16.msra.mxu1 %v409_v8 }
  0x31   :  { %358 = vmatprep.subr.bf16.mxu0 %v467_v0  ;;  %378 = vmatprep.subr.bf16.mxu1 %v467_v0 }
  0x34   :  { %359 = vmatpush3.bf16.msra.mxu0 %v401_v5  ;;  %379 = vmatpush3.bf16.msra.mxu1 %v410_v10 }
  0x35   :  { %360 = vmatprep.subr.bf16.mxu0 %v467_v0  ;;  %380 = vmatprep.subr.bf16.mxu1 %v467_v0 }
  0x38   :  { %361 = vmatpush3.bf16.msra.mxu0 %v402_v7  ;;  %381 = vmatpush3.bf16.msra.mxu1 %v411_v12 }
  0x39   :  { %362 = vmatprep.subr.bf16.mxu0 %v467_v0  ;;  %382 = vmatprep.subr.bf16.mxu1 %v467_v0 }
  0x3c   :  { %363 = vmatpush3.bf16.msra.mxu0 %v403_v9  ;;  %383 = vmatpush3.bf16.msra.mxu1 %v412_v14 }
  0x3d   :  { %364 = vmatprep.subr.bf16.mxu0 %v467_v0  ;;  %384 = vmatprep.subr.bf16.mxu1 %v467_v0 }
  0x40   :  { %365 = vmatpush3.bf16.msra.mxu0 %v404_v11  ;;  %385 = vmatpush3.bf16.msra.mxu1 %v413_v16 }
  0x41   :  { %366 = vmatprep.subr.bf16.mxu0 %v467_v0  ;;  %386 = vmatprep.subr.bf16.mxu1 %v467_v0 }
  0x44   :  { %367 = vmatpush3.bf16.msra.mxu0 %v405_v13  ;;  %387 = vmatpush3.bf16.msra.mxu1 %v414_v17 }
  0x47   :  { %369 = vmatmul.mubr.bf16.vlgmr.msra.gmra.mrb[0].mxu0 %v406_v15 }
 0x11a   :  { %v168_v19 = vpop.f32.mrb[0].mxu0 }
 0x11b   :  { %v169_v20 = vadd.f32 %v315_v18, %v168_v19  ;;  %v370_v21 = vpop.f32.mrb[1].mxu0 }
 0x11c   :  { %v171_v22 = vpop.f32.mrb[2].mxu0 }
 0x11d   :  { %v177_v23 = vmul.f32 0.4, %v169_v20  ;;  %v172_v24 = vadd.f32 %v315_v18, %v171_v22  ;;  %v371_v25 = vpop.f32.mrb[3].mxu0  ;;  %vm175_vm1 = vcmp.ge.f32.partialorder %v169_v20, 0.0 }
 0x11f   :  { %vm176_vm2 = vcmp.ge.f32.partialorder %v172_v24, 0.0  ;;  %v178_v26 = vmul.f32 0.4, %v172_v24  ;;  %v179_v27 = vsel %vm175_vm1, %v169_v20, %v177_v23 }
 0x121   :  { %v180_v28 = vsel %vm176_vm2, %v172_v24, %v178_v26 }
 0x122   :  { %v183_v29 = vpack.c.bf16 %v180_v28, %v179_v27 }
 0x124   :  { %389 = vmatmul.mubr.bf16.vlgmr.msra.gmra.mrb[0].mxu1 %v183_v29 }
 0x1f7   :  { %v282_v31 = vpop.f32.mrb[0].mxu1 }
 0x1f8   :  { %v305_v32 = vadd.f32 %v333_v30, %v282_v31  ;;  %v390_v33 = vpop.f32.mrb[1].mxu1 }
 0x1f9   :  { %v285_v34 = vpop.f32.mrb[2].mxu1 }
 0x1fa   :  { %307 = vst [vmem:[%s543_s5] sm:$0xff] %v305_v32  ;;  %v306_v35 = vadd.f32 %v333_v30, %v285_v34  ;;  %v391_v36 = vpop.f32.mrb[3].mxu1 }
 0x1fc   :  { %308 = vst [vmem:[%s543_s5 + $0x8] sm:$0xff] %v306_v35 }
 0x1fd   :  { %313 = vsyncpa [#allocation4], 1 }
 0x1fe   :  { %314 = vsyncpa [#allocation6], 1 }

</bundles_post_ra>
